<compile_context>
chip_gen: v6e
topology: v6e:2x2x1
jax: 0.10.0
libtpu: 0.0.40
codegen_flags: <defaults>
</compile_context>

<pallas_src>
import functools
import math

import jax
import jax.numpy as jnp
from jax import lax
from jax.experimental import pallas as pl
from jax.experimental.pallas import tpu as pltpu

HIDDEN = 1000        # gcn output dim / bn2 dim, hardcoded in the PyTorch module
HIDDEN_PAD = 1024    # lane-dense padded hidden (multiple of 128); sliced back to 1000
BN_EPS = 1e-5        # PyTorch BatchNorm1d default


# ---------------------------------------------------------------------------
# Fused kernel
# ---------------------------------------------------------------------------
def _multigcn_fused_kernel(aifa_ref, f_ref, w_ref, scale_ref, shift_ref, out_ref, *, k):
    """aifa_ref  : SMEM (3,)    f32   softmax([aifa1, aifa2, aifa3])
       f_ref     : VMEM (N, D)  f32   node features
       w_ref     : VMEM (D, Hp) bf16  GCN weight, zero-padded to Hp = 1024 lanes
       scale_ref : VMEM (1, Hp) f32   gamma * rsqrt(var + eps)      (0 in padded lanes)
       shift_ref : VMEM (1, Hp) f32   (bias - mean) * scale + beta  (0 in padded lanes)
       out_ref   : VMEM (N, Hp) f32   relu(bn(gcn_out))             (0 in padded lanes)
    """
    f = f_ref[...]                                   # (N, D) f32
    n = f.shape[0]

    # --- pairwise affinity E[i,j] = exp(-||f_i - f_j||^2 / 9); kept in f32 so the
    #     top-k selection matches the f32 reference exactly. ---
    gram = lax.dot_general(f, f, (((1,), (1,)), ((), ())),
                           preferred_element_type=jnp.float32)        # (N, N) on MXU
    row_ids = lax.broadcasted_iota(jnp.int32, (n, n), 0)
    col_ids = lax.broadcasted_iota(jnp.int32, (n, n), 1)
    eye = (row_ids == col_ids).astype(jnp.float32)
    sq_col = jnp.sum(f * f, axis=1, keepdims=True)                    # (N, 1)  ||f_i||^2
    # (1, N) version of the norms comes from the gram diagonal (eye is needed below
    # anyway); this avoids relying on small-shape (N,1)->(1,N) transpose lowering.
    sq_row = jnp.sum(gram * eye, axis=0, keepdims=True)               # (1, N)  ||f_j||^2
    dist2 = jnp.maximum(sq_col + sq_row - 2.0 * gram, 0.0)
    e = jnp.exp(-dist2 / 9.0)

    # --- in-kernel row-wise top-k mask. k is a static, tiny Python int, so this is a
    #     fully-unrolled "take row max, record it, knock it out" loop; ties are broken
    #     by lowest column index so exactly k entries are picked per row. ---
    colf = col_ids.astype(jnp.float32)
    mask = jnp.zeros((n, n), jnp.float32)
    work = e
    neg = jnp.float32(-1e30)
    for _ in range(k):
        row_max = jnp.max(work, axis=1, keepdims=True)
        is_max = work == row_max
        first = jnp.min(jnp.where(is_max, colf, jnp.float32(n)), axis=1, keepdims=True)
        sel = colf == first
        mask = jnp.where(sel, 1.0, mask)
        work = jnp.where(sel, neg, work)
    adj0 = mask * (1.0 - eye)                        # reference zeroes the diagonal

    # --- adjacency + symmetric normalization (transpose-free) ---
    adj = eye + adj0 * e                             # A = I + mask .* E
    d = jnp.sum(adj, axis=1, keepdims=True) + 1.0    # reference adds an extra +1
    s = lax.rsqrt(d)                                 # (N, 1)  d^-1/2
    # An   = diag(s) A diag(s)
    # An^2 = diag(s) [A @ (d^-1 .* A)] diag(s)       (d^-1 is (N,1), broadcasts over rows)
    m2 = jnp.dot(adj, (s * s) * adj, preferred_element_type=jnp.float32)   # (N, N)

    a0 = aifa_ref[0]
    a1 = aifa_ref[1]
    a2 = aifa_ref[2]

    # --- GraphConvolution: A_mix @ (X @ W), bias folded into the BN shift.
    #     A_mix = a0*I + a1*An + a2*An^2 is applied without materializing An:
    #       A_mix @ S = a0*S + s .* ((a1*A + a2*M2) @ (s .* S))
    #     bf16 MXU inputs, f32 accumulation for the two H-wide matmuls. ---
    support = jnp.dot(f.astype(jnp.bfloat16), w_ref[...],
                      preferred_element_type=jnp.float32)              # (N, Hp)
    combo = a1 * adj + a2 * m2                                         # (N, N)
    z = jnp.dot(combo.astype(jnp.bfloat16), (s * support).astype(jnp.bfloat16),
                preferred_element_type=jnp.float32)                    # (N, Hp)
    gcn_out = a0 * support + s * z

    # --- BatchNorm1d (eval) + ReLU; scale/shift precomputed in the wrapper ---
    out_ref[...] = jnp.maximum(gcn_out * scale_ref[...] + shift_ref[...], 0.0)
    # TODO(synk): training-mode dropout (p=0.6) and BN batch statistics are not
    # implemented; this kernel reproduces the eval-mode forward pass.


# ---------------------------------------------------------------------------
# Wrapper
# ---------------------------------------------------------------------------
def _pad_h(x):
    return jnp.pad(x, ((0, 0), (0, HIDDEN_PAD - HIDDEN)))


def multigcn_forward(features, params, n_way):
    n, _ = features.shape
    k = int(round(n / n_way))

    # Fold GCN bias + eval-mode BatchNorm into a single per-lane scale/shift; pad
    # H -> Hp = 1024 with zeros so padded lanes stay inert (relu(0*x + 0) = 0).
    scale = params["bn_gamma"] * lax.rsqrt(params["bn_var"] + BN_EPS)            # (1, H)
    shift = (params["b_gcn"] - params["bn_mean"]) * scale + params["bn_beta"]    # (1, H)
    w_p = _pad_h(params["w_gcn"]).astype(jnp.bfloat16)                           # (D, Hp)
    scale_p = _pad_h(scale)
    shift_p = _pad_h(shift)

    # aifa = softmax([a1, a2, a3]) (all zeros -> [1/3, 1/3, 1/3]); scalars live in SMEM.
    aifa = jax.nn.softmax(params["aifa"]).astype(jnp.float32)

    vmem = pl.BlockSpec(memory_space=pltpu.MemorySpace.VMEM)
    smem = pl.BlockSpec(memory_space=pltpu.MemorySpace.SMEM)

    # Gridless: the whole problem (N=16 nodes, Hp=1024) fits comfortably in VMEM.
    # TODO(synk): for large N, tile over row blocks with a ("parallel","arbitrary") grid
    # (2-TC sharding on v7x) and switch the An^2 path to the Horner form when N > H.
    out_padded = pl.pallas_call(
        functools.partial(_multigcn_fused_kernel, k=k),
        out_shape=jax.ShapeDtypeStruct((n, HIDDEN_PAD), jnp.float32),
        in_specs=[smem, vmem, vmem, vmem, vmem],
        out_specs=vmem,
    )(aifa, features, w_p, scale_p, shift_p)
    return out_padded[:, :HIDDEN]


# ---------------------------------------------------------------------------
# Deterministic parameter initialization (mirrors the module's __init__)
# ---------------------------------------------------------------------------
def init_params(key, input_dim):
    # gcn.weight: kaiming_uniform_ on (input_dim, HIDDEN); PyTorch fan_in = size(1) = HIDDEN
    bound = math.sqrt(6.0 / HIDDEN)
    w_gcn = jax.random.uniform(key, (input_dim, HIDDEN), jnp.float32, -bound, bound)
    return {
        "w_gcn": w_gcn,
        "b_gcn": jnp.zeros((1, HIDDEN), jnp.float32),       # init.zeros_
        "aifa": jnp.zeros((3,), jnp.float32),               # aifa1/2/3 all filled with 0
        "bn_gamma": jnp.ones((1, HIDDEN), jnp.float32),
        "bn_beta": jnp.zeros((1, HIDDEN), jnp.float32),
        "bn_mean": jnp.zeros((1, HIDDEN), jnp.float32),
        "bn_var": jnp.ones((1, HIDDEN), jnp.float32),
        # note: MultiGCN.weight and bn1 are defined in __init__ but unused in forward.
    }


# ---------------------------------------------------------------------------
# Pure-JAX reference (eval-mode forward of the PyTorch module) for a sanity check
# ---------------------------------------------------------------------------
def multigcn_reference(features, params, n_way):
    n = features.shape[0]
    k = int(round(n / n_way))
    diff = features[:, None, :] - features[None, :, :]
    e = jnp.exp(-jnp.sum(diff * diff, axis=-1) / 9.0)
    _, pos = lax.top_k(e, k)
    rows = jnp.arange(n)
    adj0 = jnp.zeros((n, n), jnp.float32).at[rows[:, None], pos].set(1.0)
    adj0 = adj0.at[rows, rows].set(0.0)
    adj = jnp.eye(n, dtype=jnp.float32) + adj0 * e
    d = jnp.sum(adj, axis=1) + 1.0
    inv_d = 1.0 / jnp.sqrt(d)
    adj_n = adj * inv_d[:, None] * inv_d[None, :]
    aifa = jax.nn.softmax(params["aifa"])
    a_mix = aifa[0] * jnp.eye(n, dtype=jnp.float32) + aifa[1] * adj_n + aifa[2] * (adj_n @ adj_n)
    out = a_mix @ (features @ params["w_gcn"]) + params["b_gcn"]
    scale = params["bn_gamma"] * lax.rsqrt(params["bn_var"] + BN_EPS)
    out = (out - params["bn_mean"]) * scale + params["bn_beta"]
    return jnp.maximum(out, 0.0)


if __name__ == "__main__":
    key = jax.random.PRNGKey(0)
    k_feat, k_w = jax.random.split(key)

    N, D, N_WAY = 16, 32, 4        # 16 nodes, 32-dim features, 4-way episode -> k = 4
    features = jax.random.normal(k_feat, (N, D), dtype=jnp.float32)
    params = init_params(k_w, D)

    out = multigcn_forward(features, params, N_WAY)
    out = jax.block_until_ready(out)
    assert out.shape == (N, HIDDEN) and out.dtype == jnp.float32
    assert bool(jnp.all(jnp.isfinite(out))) and bool(jnp.all(out >= 0.0))

    # Loose tolerance: the two H-wide matmuls use bf16 MXU inputs (f32 accumulate).
    ref = multigcn_reference(features, params, N_WAY)
    max_err = float(jnp.max(jnp.abs(out - ref)))
    assert max_err < 1e-1, f"max abs error vs reference: {max_err}"

    print("KERNEL_OK")
</pallas_src>

<mosaic_0001>
module attributes {stable_mosaic.version = 11 : i64} {
  func.func @_multigcn_fused_kernel(%arg0: memref<3xf32, #tpu.memory_space<smem>>, %arg1: memref<16x32xf32, #tpu.memory_space<vmem>>, %arg2: memref<32x1024xbf16, #tpu.memory_space<vmem>>, %arg3: memref<1x1024xf32, #tpu.memory_space<vmem>>, %arg4: memref<1x1024xf32, #tpu.memory_space<vmem>>, %arg5: memref<16x1024xf32, #tpu.memory_space<vmem>>) attributes {dimension_semantics = [], scalar_prefetch = 0 : i64, scratch_operands = 0 : i64, tpu.core_type = #tpu.core_type<tc>} {
    %c0 = arith.constant 0 : index
    %c0_0 = arith.constant 0 : index
    %0 = vector.load %arg1[%c0, %c0_0] : memref<16x32xf32, #tpu.memory_space<vmem>>, vector<16x32xf32>
    %cst = arith.constant dense<0.000000e+00> : vector<16x16xf32>
    %1 = tpu.matmul %0, %0, %cst {dimension_numbers = #tpu.dot_dimension_numbers<[1], [1], [0], [0], [0, 0, 1, 0], [], []>} : vector<16x32xf32>, vector<16x32xf32>, vector<16x16xf32> -> vector<16x16xf32>
    %2 = tpu.iota {dimensions = array<i32: 0>} : vector<16x16xi32>
    %3 = tpu.iota {dimensions = array<i32: 1>} : vector<16x16xi32>
    %4 = arith.cmpi eq, %2, %3 : vector<16x16xi32>
    %5 = arith.extui %4 : vector<16x16xi1> to vector<16x16xi32>
    %6 = arith.sitofp %5 : vector<16x16xi32> to vector<16x16xf32>
    %7 = arith.mulf %0, %0 : vector<16x32xf32>
    %cst_1 = arith.constant dense<0.000000e+00> : vector<16xf32>
    %8 = vector.multi_reduction <add>, %7, %cst_1 [1] : vector<16x32xf32> to vector<16xf32>
    %9 = vector.shape_cast %8 : vector<16xf32> to vector<16x1xf32>
    %10 = arith.mulf %1, %6 : vector<16x16xf32>
    %cst_2 = arith.constant dense<0.000000e+00> : vector<16xf32>
    %11 = vector.multi_reduction <add>, %10, %cst_2 [0] : vector<16x16xf32> to vector<16xf32>
    %12 = vector.shape_cast %11 : vector<16xf32> to vector<1x16xf32>
    %13 = vector.broadcast %9 : vector<16x1xf32> to vector<16x16xf32>
    %14 = vector.broadcast %12 : vector<1x16xf32> to vector<16x16xf32>
    %15 = arith.addf %13, %14 : vector<16x16xf32>
    %cst_3 = arith.constant 2.000000e+00 : f32
    %16 = vector.broadcast %cst_3 : f32 to vector<16x16xf32>
    %17 = arith.mulf %16, %1 : vector<16x16xf32>
    %18 = arith.subf %15, %17 : vector<16x16xf32>
    %cst_4 = arith.constant 0.000000e+00 : f32
    %19 = vector.broadcast %cst_4 : f32 to vector<16x16xf32>
    %20 = arith.maximumf %18, %19 : vector<16x16xf32>
    %cst_5 = arith.constant 0.000000e+00 : f32
    %21 = vector.broadcast %cst_5 : f32 to vector<16x16xf32>
    %22 = arith.subf %21, %20 : vector<16x16xf32>
    %cst_6 = arith.constant 9.000000e+00 : f32
    %23 = vector.broadcast %cst_6 : f32 to vector<16x16xf32>
    %24 = arith.divf %22, %23 : vector<16x16xf32>
    %25 = math.exp %24 : vector<16x16xf32>
    %26 = arith.sitofp %3 : vector<16x16xi32> to vector<16x16xf32>
    %cst_7 = arith.constant 0.000000e+00 : f32
    %27 = vector.broadcast %cst_7 : f32 to vector<16x16xf32>
    %cst_8 = arith.constant dense<0xFF800000> : vector<16xf32>
    %28 = vector.multi_reduction <maximumf>, %25, %cst_8 [1] : vector<16x16xf32> to vector<16xf32>
    %29 = vector.shape_cast %28 : vector<16xf32> to vector<16x1xf32>
    %30 = vector.broadcast %29 : vector<16x1xf32> to vector<16x16xf32>
    %31 = arith.cmpf oeq, %25, %30 : vector<16x16xf32>
    %cst_9 = arith.constant 1.600000e+01 : f32
    %32 = vector.broadcast %cst_9 : f32 to vector<16x16xf32>
    %33 = arith.select %31, %26, %32 : vector<16x16xi1>, vector<16x16xf32>
    %cst_10 = arith.constant dense<0x7F800000> : vector<16xf32>
    %34 = vector.multi_reduction <minimumf>, %33, %cst_10 [1] : vector<16x16xf32> to vector<16xf32>
    %35 = vector.shape_cast %34 : vector<16xf32> to vector<16x1xf32>
    %36 = vector.broadcast %35 : vector<16x1xf32> to vector<16x16xf32>
    %37 = arith.cmpf oeq, %26, %36 : vector<16x16xf32>
    %cst_11 = arith.constant 1.000000e+00 : f32
    %38 = vector.broadcast %cst_11 : f32 to vector<16x16xf32>
    %39 = arith.select %37, %38, %27 : vector<16x16xi1>, vector<16x16xf32>
    %cst_12 = arith.constant -1.000000e+30 : f32
    %40 = vector.broadcast %cst_12 : f32 to vector<16x16xf32>
    %41 = arith.select %37, %40, %25 : vector<16x16xi1>, vector<16x16xf32>
    %cst_13 = arith.constant dense<0xFF800000> : vector<16xf32>
    %42 = vector.multi_reduction <maximumf>, %41, %cst_13 [1] : vector<16x16xf32> to vector<16xf32>
    %43 = vector.shape_cast %42 : vector<16xf32> to vector<16x1xf32>
    %44 = vector.broadcast %43 : vector<16x1xf32> to vector<16x16xf32>
    %45 = arith.cmpf oeq, %41, %44 : vector<16x16xf32>
    %cst_14 = arith.constant 1.600000e+01 : f32
    %46 = vector.broadcast %cst_14 : f32 to vector<16x16xf32>
    %47 = arith.select %45, %26, %46 : vector<16x16xi1>, vector<16x16xf32>
    %cst_15 = arith.constant dense<0x7F800000> : vector<16xf32>
    %48 = vector.multi_reduction <minimumf>, %47, %cst_15 [1] : vector<16x16xf32> to vector<16xf32>
    %49 = vector.shape_cast %48 : vector<16xf32> to vector<16x1xf32>
    %50 = vector.broadcast %49 : vector<16x1xf32> to vector<16x16xf32>
    %51 = arith.cmpf oeq, %26, %50 : vector<16x16xf32>
    %cst_16 = arith.constant 1.000000e+00 : f32
    %52 = vector.broadcast %cst_16 : f32 to vector<16x16xf32>
    %53 = arith.select %51, %52, %39 : vector<16x16xi1>, vector<16x16xf32>
    %cst_17 = arith.constant -1.000000e+30 : f32
    %54 = vector.broadcast %cst_17 : f32 to vector<16x16xf32>
    %55 = arith.select %51, %54, %41 : vector<16x16xi1>, vector<16x16xf32>
    %cst_18 = arith.constant dense<0xFF800000> : vector<16xf32>
    %56 = vector.multi_reduction <maximumf>, %55, %cst_18 [1] : vector<16x16xf32> to vector<16xf32>
    %57 = vector.shape_cast %56 : vector<16xf32> to vector<16x1xf32>
    %58 = vector.broadcast %57 : vector<16x1xf32> to vector<16x16xf32>
    %59 = arith.cmpf oeq, %55, %58 : vector<16x16xf32>
    %cst_19 = arith.constant 1.600000e+01 : f32
    %60 = vector.broadcast %cst_19 : f32 to vector<16x16xf32>
    %61 = arith.select %59, %26, %60 : vector<16x16xi1>, vector<16x16xf32>
    %cst_20 = arith.constant dense<0x7F800000> : vector<16xf32>
    %62 = vector.multi_reduction <minimumf>, %61, %cst_20 [1] : vector<16x16xf32> to vector<16xf32>
    %63 = vector.shape_cast %62 : vector<16xf32> to vector<16x1xf32>
    %64 = vector.broadcast %63 : vector<16x1xf32> to vector<16x16xf32>
    %65 = arith.cmpf oeq, %26, %64 : vector<16x16xf32>
    %cst_21 = arith.constant 1.000000e+00 : f32
    %66 = vector.broadcast %cst_21 : f32 to vector<16x16xf32>
    %67 = arith.select %65, %66, %53 : vector<16x16xi1>, vector<16x16xf32>
    %cst_22 = arith.constant -1.000000e+30 : f32
    %68 = vector.broadcast %cst_22 : f32 to vector<16x16xf32>
    %69 = arith.select %65, %68, %55 : vector<16x16xi1>, vector<16x16xf32>
    %cst_23 = arith.constant dense<0xFF800000> : vector<16xf32>
    %70 = vector.multi_reduction <maximumf>, %69, %cst_23 [1] : vector<16x16xf32> to vector<16xf32>
    %71 = vector.shape_cast %70 : vector<16xf32> to vector<16x1xf32>
    %72 = vector.broadcast %71 : vector<16x1xf32> to vector<16x16xf32>
    %73 = arith.cmpf oeq, %69, %72 : vector<16x16xf32>
    %cst_24 = arith.constant 1.600000e+01 : f32
    %74 = vector.broadcast %cst_24 : f32 to vector<16x16xf32>
    %75 = arith.select %73, %26, %74 : vector<16x16xi1>, vector<16x16xf32>
    %cst_25 = arith.constant dense<0x7F800000> : vector<16xf32>
    %76 = vector.multi_reduction <minimumf>, %75, %cst_25 [1] : vector<16x16xf32> to vector<16xf32>
    %77 = vector.shape_cast %76 : vector<16xf32> to vector<16x1xf32>
    %78 = vector.broadcast %77 : vector<16x1xf32> to vector<16x16xf32>
    %79 = arith.cmpf oeq, %26, %78 : vector<16x16xf32>
    %cst_26 = arith.constant 1.000000e+00 : f32
    %80 = vector.broadcast %cst_26 : f32 to vector<16x16xf32>
    %81 = arith.select %79, %80, %67 : vector<16x16xi1>, vector<16x16xf32>
    %cst_27 = arith.constant 1.000000e+00 : f32
    %82 = vector.broadcast %cst_27 : f32 to vector<16x16xf32>
    %83 = arith.subf %82, %6 : vector<16x16xf32>
    %84 = arith.mulf %81, %83 : vector<16x16xf32>
    %85 = arith.mulf %84, %25 : vector<16x16xf32>
    %86 = arith.addf %6, %85 : vector<16x16xf32>
    %cst_28 = arith.constant dense<0.000000e+00> : vector<16xf32>
    %87 = vector.multi_reduction <add>, %86, %cst_28 [1] : vector<16x16xf32> to vector<16xf32>
    %88 = vector.shape_cast %87 : vector<16xf32> to vector<16x1xf32>
    %cst_29 = arith.constant 1.000000e+00 : f32
    %89 = vector.broadcast %cst_29 : f32 to vector<16x1xf32>
    %90 = arith.addf %88, %89 : vector<16x1xf32>
    %91 = math.rsqrt %90 : vector<16x1xf32>
    %92 = arith.mulf %91, %91 : vector<16x1xf32>
    %93 = vector.broadcast %92 : vector<16x1xf32> to vector<16x16xf32>
    %94 = arith.mulf %93, %86 : vector<16x16xf32>
    %cst_30 = arith.constant dense<0.000000e+00> : vector<16x16xf32>
    %95 = tpu.matmul %86, %94, %cst_30 {dimension_numbers = #tpu.dot_dimension_numbers<[1], [0], [0], [1], [0, 0, 1, 1], [], []>} : vector<16x16xf32>, vector<16x16xf32>, vector<16x16xf32> -> vector<16x16xf32>
    %c0_31 = arith.constant 0 : index
    %96 = memref.load %arg0[%c0_31] : memref<3xf32, #tpu.memory_space<smem>>
    %c1 = arith.constant 1 : index
    %97 = memref.load %arg0[%c1] : memref<3xf32, #tpu.memory_space<smem>>
    %c2 = arith.constant 2 : index
    %98 = memref.load %arg0[%c2] : memref<3xf32, #tpu.memory_space<smem>>
    %99 = arith.truncf %0 : vector<16x32xf32> to vector<16x32xbf16>
    %c0_32 = arith.constant 0 : index
    %c0_33 = arith.constant 0 : index
    %100 = vector.load %arg2[%c0_32, %c0_33] : memref<32x1024xbf16, #tpu.memory_space<vmem>>, vector<32x1024xbf16>
    %cst_34 = arith.constant dense<0.000000e+00> : vector<16x1024xf32>
    %101 = tpu.matmul %99, %100, %cst_34 {dimension_numbers = #tpu.dot_dimension_numbers<[1], [0], [0], [1], [0, 0, 1, 1], [], []>} : vector<16x32xbf16>, vector<32x1024xbf16>, vector<16x1024xf32> -> vector<16x1024xf32>
    %102 = vector.broadcast %97 : f32 to vector<16x16xf32>
    %103 = arith.mulf %102, %86 : vector<16x16xf32>
    %104 = vector.broadcast %98 : f32 to vector<16x16xf32>
    %105 = arith.mulf %104, %95 : vector<16x16xf32>
    %106 = arith.addf %103, %105 : vector<16x16xf32>
    %107 = arith.truncf %106 : vector<16x16xf32> to vector<16x16xbf16>
    %108 = vector.broadcast %91 : vector<16x1xf32> to vector<16x1024xf32>
    %109 = arith.mulf %108, %101 : vector<16x1024xf32>
    %110 = arith.truncf %109 : vector<16x1024xf32> to vector<16x1024xbf16>
    %cst_35 = arith.constant dense<0.000000e+00> : vector<16x1024xf32>
    %111 = tpu.matmul %107, %110, %cst_35 {dimension_numbers = #tpu.dot_dimension_numbers<[1], [0], [0], [1], [0, 0, 1, 1], [], []>} : vector<16x16xbf16>, vector<16x1024xbf16>, vector<16x1024xf32> -> vector<16x1024xf32>
    %112 = vector.broadcast %96 : f32 to vector<16x1024xf32>
    %113 = arith.mulf %112, %101 : vector<16x1024xf32>
    %114 = vector.broadcast %91 : vector<16x1xf32> to vector<16x1024xf32>
    %115 = arith.mulf %114, %111 : vector<16x1024xf32>
    %116 = arith.addf %113, %115 : vector<16x1024xf32>
    %c0_36 = arith.constant 0 : index
    %c0_37 = arith.constant 0 : index
    %117 = vector.load %arg3[%c0_36, %c0_37] : memref<1x1024xf32, #tpu.memory_space<vmem>>, vector<1x1024xf32>
    %118 = vector.broadcast %117 : vector<1x1024xf32> to vector<16x1024xf32>
    %119 = arith.mulf %116, %118 : vector<16x1024xf32>
    %c0_38 = arith.constant 0 : index
    %c0_39 = arith.constant 0 : index
    %120 = vector.load %arg4[%c0_38, %c0_39] : memref<1x1024xf32, #tpu.memory_space<vmem>>, vector<1x1024xf32>
    %121 = vector.broadcast %120 : vector<1x1024xf32> to vector<16x1024xf32>
    %122 = arith.addf %119, %121 : vector<16x1024xf32>
    %cst_40 = arith.constant 0.000000e+00 : f32
    %123 = vector.broadcast %cst_40 : f32 to vector<16x1024xf32>
    %124 = arith.maximumf %122, %123 : vector<16x1024xf32>
    %c0_41 = arith.constant 0 : index
    %c0_42 = arith.constant 0 : index
    %125 = vector.load %arg5[%c0_41, %c0_42] : memref<16x1024xf32, #tpu.memory_space<vmem>>, vector<16x1024xf32>
    tpu.vector_store %arg5[%c0_41, %c0_42], %124 {strides = array<i32>} : memref<16x1024xf32, #tpu.memory_space<vmem>>, vector<16x1024xf32>,
    return
  }
}

</mosaic_0001>

<bundles_post_ra>
// kernel: tpu_custom_call.1
= control target key start
LH: loop header
LB: loop body
LE: loop exit
PB: predicated region body
PF: predicated region fallthrough
CT: control target
= control target key end

     0   :  { %10 = vsyncpa [#allocation5], 0  ;;  %s1650_s0 = inlined_call_operand.hbm [shape: f32[3], index: 0, kind: input, shape index: {}]   ;;  %s1651_s1 = inlined_call_operand.hbm [shape: f32[16,32], index: 1, kind: input, shape index: {}]   ;;  %s1652_s2 = inlined_call_operand.hbm [shape: bf16[32,1024], index: 2, kind: input, shape index: {}]   ;;  %s1653_s3 = inlined_call_operand.hbm [shape: f32[1,1024], index: 3, kind: input, shape index: {}]   ;;  %s1654_s4 = inlined_call_operand.hbm [shape: f32[1,1024], index: 4, kind: input, shape index: {}]   ;;  %s1655_s5 = inlined_call_operand.hbm [shape: f32[16,1024], index: 5, kind: output, shape index: {}]  }
   0x1   :  { %11 = vsyncpa [#allocation3], 0 }
   0x2   :  { %12 = vsyncpa [#allocation8], 0 }
   0x3   :  { %13 = vsyncpa [#allocation11], 0 }
   0x4   :  { %14 = vsyncpa [#allocation4], 0  ;;  %s1302_s18 = smov [#allocation7]  }
   0x5   :  { %s40_s19 = sshll.u32 %s1302_s18, 4  ;;  %s41_s19 = int_to_ptr.vmem [resolvable:$true] %s40_s19 }
   0x6   :  { %s1192_s20 = scalar_lea.vmem %s41_s19, 2048  ;;  %p1197_p1 = scmp.lt.s32.totalorder %s41_s19, %s41_s19 }
   0x7   :  { %p1193_p0 = scmp.ne.s32.totalorder %s41_s19, %s1192_s20  ;;  %p1198_p2 = scmp.lt.s32.totalorder %s1192_s20, %s1192_s20 }
   0x9   :  { %p1199_p3 = por %p1198_p2, %p1197_p1 }
   0xb   :  { %p1200_p4 = pnand %p1199_p3, %p1193_p0 }
   0xd   :  { %1203 = shalt.err (!%p1200_p4)
}
   0xe   :  { %s1303_s21 = smov 512   ;;  %s1304_s22 = smov 32  }
   0xf   :  { %46 = dma.hbm_to_vmem [thread:$0]  %s1652_s2, 2048, %s41_s19, [#allocation8], %s1303_s21, %s1303_s21, %s1304_s22  }
  0x10   :  { %s1305_s25 = smov [#allocation2]   ;;  %s1306_s28 = smov [#allocation6]  }
  0x11   :  { %22 = dma.hbm_to_smem %s1650_s0, 16, %s1305_s25, [#allocation5]  }
  0x12   :  { %s28_s29 = sshll.u32 %s1306_s28, 4  ;;  %s29_s29 = int_to_ptr.vmem [resolvable:$true] %s28_s29 }
  0x13   :  { %s1220_s30 = scalar_lea.vmem %s29_s29, 256  ;;  %p1225_p6 = scmp.lt.s32.totalorder %s29_s29, %s29_s29 }
  0x14   :  { %p1221_p5 = scmp.ne.s32.totalorder %s29_s29, %s1220_s30  ;;  %p1226_p7 = scmp.lt.s32.totalorder %s1220_s30, %s1220_s30 }
  0x16   :  { %p1227_p8 = por %p1226_p7, %p1225_p6 }
  0x18   :  { %p1228_p9 = pnand %p1227_p8, %p1221_p5 }
  0x1a   :  { %1231 = shalt.err (!%p1228_p9)
}
  0x1b   :  { %s1307_s6 = smov 128   ;;  %s1308_s7 = smov 8  }
  0x1c   :  { %34 = dma.hbm_to_vmem [thread:$0]  %s1651_s1, 256, %s29_s29, [#allocation3], %s1307_s6, %s1307_s6, %s1308_s7  }
  0x1d   :  { %s1309_s2 = smov [#allocation9]   ;;  %s1310_s0 = smov [#allocation10]  }
  0x1e   :  { %s53_s10 = sshll.u32 %s1309_s2, 4  ;;  %s63_s11 = sshll.u32 %s1310_s0, 4  ;;  %s54_s10 = int_to_ptr.vmem [resolvable:$true] %s53_s10  ;;  %s64_s11 = int_to_ptr.vmem [resolvable:$true] %s63_s11 }
  0x1f   :  { %s1240_s12 = scalar_lea.vmem %s54_s10, 128  ;;  %p1245_p11 = scmp.lt.s32.totalorder %s54_s10, %s54_s10 }
  0x20   :  { %p1241_p10 = scmp.ne.s32.totalorder %s54_s10, %s1240_s12  ;;  %p1246_p12 = scmp.lt.s32.totalorder %s1240_s12, %s1240_s12 }
  0x22   :  { %p1247_p13 = por %p1246_p12, %p1245_p11 }
  0x24   :  { %p1248_p0 = pnand %p1247_p13, %p1241_p10 }
  0x26   :  { %1251 = shalt.err (!%p1248_p0)
}
  0x27   :  { %56 = dma.hbm_to_vmem [thread:$0]  %s1653_s3, 128, %s54_s10, [#allocation8]  }
  0x28   :  { %s1260_s15 = scalar_lea.vmem %s64_s11, 128  ;;  %p1265_p2 = scmp.lt.s32.totalorder %s64_s11, %s64_s11 }
  0x29   :  { %p1261_p1 = scmp.ne.s32.totalorder %s64_s11, %s1260_s15  ;;  %p1266_p3 = scmp.lt.s32.totalorder %s1260_s15, %s1260_s15 }
  0x2b   :  { %p1267_p4 = por %p1266_p3, %p1265_p2 }
  0x2d   :  { %p1268_p5 = pnand %p1267_p4, %p1261_p1 }
  0x2f   :  { %1271 = shalt.err (!%p1268_p5)
}
  0x30   :  { %66 = dma.hbm_to_vmem [thread:$0]  %s1654_s4, 128, %s64_s11, [#allocation11]  }
  0x31   :  { %1292 = dma.done.wait [#allocation5], 16  }
  0x32   :  { %1293 = vsyncadd [#allocation5], 4294967280 }
  0x33   :  { %1294 = dma.done.wait [#allocation3], 256  }
  0x34   :  { %1295 = vsyncadd [#allocation3], 4294967040 }
  0x35   :  { %1296 = dma.done.wait [#allocation8], 2176  }
  0x36   :  { %1297 = vsyncadd [#allocation8], 4294965120 }
  0x37   :  { %1298 = dma.done.wait [#allocation11], 128  }
  0x38   :  { %1299 = vsyncadd [#allocation11], 4294967168 }
  0x39   :  { %82 = sfence }
  0x3a   :  { %v1361_v0 = vld [vmem:[#allocation6 + $0x8] sm:$0xff]  ;;  %vm86_vm0 = vcmask 261120   ;;  %v1363_v1 = vld [vmem:[#allocation6] sm:$0xff]  ;;  %v168_v6 = vlaneseq  ;;  %v1311_v10 = vmov 0.0   ;;  %vm189_vm3 = vcmask 130048   ;;  %s1115_s3 = sld [smem:[#allocation2 + $0x2]] }
  0x3b   :  { %1148 = vmatprep.subr.msk.mxu0 %vm86_vm0, %v1361_v0  ;;  %1152 = vmatprep.mubr.msk.f32.mxu0 %vm86_vm0, %v1363_v1  ;;  %v180_v2 = vmul.f32 %v1361_v0, %v1361_v0  ;;  %v179_v3 = vmul.f32 %v1363_v1, %v1363_v1  ;;  %s1114_s4 = sld [smem:[#allocation2 + $0x1]]  ;;  %s1313_s18 = smov [#allocation12]  }
  0x3c   :  { %1149 = vmatpush3.xpose.msk.msra.mxu0 %vm86_vm0, %v1361_v0  ;;  %v1383_v7 = vshrl.u32 %v168_v6, 7  ;;  %v172_v9 = vand.u32 127, %v168_v6  ;;  %s406_s17 = sld [smem:[#allocation2]]  ;;  %s1091_s19 = sshll.u32 %s1313_s18, 4  ;;  %s1092_s19 = int_to_ptr.vmem [resolvable:$true] %s1091_s19 }
  0x3d   :  { %1150 = vmatprep.subr.msk.mxu0 %vm86_vm0, %v1363_v1  ;;  %v184_v4 = vsel %vm86_vm0, %v180_v2, 0.0  ;;  %v181_v5 = vsel %vm86_vm0, %v179_v3, 0.0  ;;  %s1272_s20 = scalar_lea.vmem %s1092_s19, 2048  ;;  %p1277_p7 = scmp.lt.s32.totalorder %s1092_s19, %s1092_s19 }
  0x3e   :  { %185 = vadd.xlane.f32.xlu0 %v184_v4  ;;  %v170_v8 = vadd.s32 8, %v1383_v7  ;;  %vm173_vm2 = vcmp.eq.s32.totalorder %v1383_v7, %v172_v9  ;;  %v1405_v46 = vcvt.s32.f32 %v172_v9  ;;  %p1273_p6 = scmp.ne.s32.totalorder %s1092_s19, %s1272_s20  ;;  %p1278_p8 = scmp.lt.s32.totalorder %s1272_s20, %s1272_s20 }
  0x3f   :  { %v1391_v13 = vsel %vm173_vm2, 1.0, %v1311_v10 }
  0x40   :  { %1151 = vmatpush3.xpose.msk.msra.mxu0 %vm86_vm0, %v1363_v1  ;;  %vm174_vm1 = vcmp.eq.s32.totalorder %v170_v8, %v172_v9  ;;  %p1279_p9 = por %p1278_p8, %p1277_p7 }
  0x41   :  { %v1388_v11 = vsel %vm174_vm1, 1.0, %v1311_v10 }
  0x42   :  { %182 = vadd.xlane.f32.xlu0 %v181_v5  ;;  %p1280_p10 = pnand %p1279_p9, %p1273_p6 }
  0x43   :  { %1153 = vmatmul.mubr.msk.f32.vlgmr.msra.gmra.mxu0 %vm86_vm0, %v1361_v0 }
  0xc7   :  { %v186_v22 = vpop.xlane.xlu0 %185 }
  0xcb   :  { %v183_v26 = vpop.xlane.xlu0 %182 }
 0x103   :  { %v1154_v12 = vpop.f32.mrf.mxu0 }
 0x104   :  { %v188_v14 = vmul.f32 %v1154_v12, %v1388_v11  ;;  %v202_v28 = vmul.f32 2.0, %v1154_v12 }
 0x105   :  { %v159_v15 = vpop.f32.mrf.mxu0 }
 0x106   :  { %v187_v16 = vmul.f32 %v1391_v13, %v159_v15  ;;  %v191_v17 = vsel %vm189_vm3, %v188_v14, 0.0  ;;  %v201_v29 = vmul.f32 2.0, %v159_v15 }
 0x108   :  { %v190_v18 = vsel %vm189_vm3, %v187_v16, 0.0 }
 0x109   :  { %v192_v19 = vadd.f32 %v191_v17, %v190_v18 }
 0x10b   :  { %v193_v20 = vrot.slane %v192_v19, 4 }
 0x10d   :  { %v194_v21 = vadd.f32 %v193_v20, %v192_v19 }
 0x10f   :  { %v195_v23 = vrot.slane %v194_v21, 2 }
 0x111   :  { %v196_v24 = vadd.f32 %v195_v23, %v194_v21 }
 0x113   :  { %v197_v25 = vrot.slane %v196_v24, 1 }
 0x115   :  { %v198_v27 = vadd.f32 %v197_v25, %v196_v24 }
 0x117   :  { %v200_v30 = vadd.f32 %v198_v27, %v186_v22  ;;  %v199_v31 = vadd.f32 %v198_v27, %v183_v26 }
 0x119   :  { %v204_v32 = vsub.f32 %v200_v30, %v202_v28  ;;  %v203_v33 = vsub.f32 %v199_v31, %v201_v29  ;;  %v419_v30 = vld [vmem:[#allocation7 + $0x48] sm:$0xff] }
 0x11a   :  { %v423_v31 = vld [vmem:[#allocation7 + $0x68] sm:$0xff] }
 0x11b   :  { %v206_v34 = vmax.f32 %v204_v32, 0.0  ;;  %v205_v35 = vmax.f32 %v203_v33, 0.0  ;;  %v411_v32 = vld [vmem:[#allocation7 + $0x8] sm:$0xff]  ;;  %v1126_v33 = vcombine.low %v419_v30, %v423_v31 }
 0x11d   :  { %v208_v36 = vsub.f32 0.0, %v206_v34  ;;  %v207_v37 = vsub.f32 0.0, %v205_v35  ;;  %v1127_v34 = vcombine.high %v419_v30, %v423_v31  ;;  %v415_v35 = vld [vmem:[#allocation7 + $0x28] sm:$0xff] }
 0x11f   :  { %v211_v38 = vmul.f32 0.11111111, %v208_v36  ;;  %v210_v39 = vmul.f32 0.11111111, %v207_v37  ;;  %v1312_v36 = vmov 0   ;;  %v1119_v37 = vcombine.high %v411_v32, %v415_v35  ;;  %564 = vmatprep.subr.bf16.mxu0 %v1127_v34 }
 0x120   :  { %584 = vmatprep.mubr.bf16.mxu0 %v1312_v36  ;;  %565 = vmatpush1.bf16.msra.mxu0 %v1126_v33  ;;  %v414_v33 = vld [vmem:[#allocation7 + $0x20] sm:$0xff] }
 0x121   :  { %v214_v40 = vmul.f32 1.442695, %v211_v38  ;;  %v212_v41 = vmul.f32 1.442695, %v210_v39  ;;  %v421_v38 = vld [vmem:[#allocation7 + $0x58] sm:$0xff]  ;;  %566 = vmatprep.subr.bf16.mxu0 %v1119_v37 }
 0x122   :  { %v425_v39 = vld [vmem:[#allocation7 + $0x78] sm:$0xff] }
 0x123   :  { %1176 = vpow2.f32 %v214_v40  ;;  %v1118_v40 = vcombine.low %v411_v32, %v415_v35  ;;  %v410_v32 = vld [vmem:[#allocation7] sm:$0xff] }
 0x124   :  { %1178 = vpow2.f32 %v212_v41  ;;  %v1131_v41 = vcombine.high %v421_v38, %v425_v39 }
 0x125   :  { %567 = vmatpush1.bf16.msra.mxu0 %v1118_v40  ;;  %v420_v40 = vld [vmem:[#allocation7 + $0x50] sm:$0xff] }
 0x126   :  { %650 = vmatprep.subr.bf16.mxu0 %v1131_v41  ;;  %v424_v41 = vld [vmem:[#allocation7 + $0x70] sm:$0xff] }
 0x130   :  { %v1397_v42 = vpop.eup %1176 }
 0x131   :  { %v220_v43 = vsel %vm189_vm3, %v1397_v42, -inf  ;;  %v1401_v44 = vpop.eup %1178 }
 0x132   :  { %221 = vmax.xlane.f32.xlu1 %v220_v43  ;;  %v217_v45 = vsel %vm189_vm3, %v1401_v44, -inf  ;;  %v413_v43 = vld [vmem:[#allocation7 + $0x18] sm:$0xff] }
 0x136   :  { %218 = vmax.xlane.f32.xlu1 %v217_v45  ;;  %v417_v45 = vld [vmem:[#allocation7 + $0x38] sm:$0xff] }
 0x1bb   :  { %v222_v47 = vpop.xlane.xlu1 %221 }
 0x1bc   :  { %vm224_vm4 = vcmp.eq.f32.partialorder %v1397_v42, %v222_v47  ;;  %v1448_v47 = vpack.c.bf16 %v1361_v0, %v1363_v1 }
 0x1bd   :  { %v226_v48 = vsel %vm224_vm4, %v1405_v46, 16.0 }
 0x1be   :  { %v230_v49 = vsel %vm189_vm3, %v226_v48, inf  ;;  %v1130_v48 = vcombine.low %v421_v38, %v425_v39  ;;  %1133 = vmatmul.mubr.msk.bf16.vlgmr.msra.gmra.mxu0 %vm86_vm0, %v1448_v47  ;;  %v1117_v39 = vcombine.high %v410_v32, %v414_v33 }
 0x1bf   :  { %231 = vmin.xlane.f32.xlu0 %v230_v49  ;;  %v219_v50 = vpop.xlane.xlu1 %218  ;;  %v1123_v49 = vcombine.high %v413_v43, %v417_v45  ;;  %670 = vmatprep.mubr.bf16.mxu0 %v1312_v36 }
 0x1c0   :  { %vm223_vm5 = vcmp.eq.f32.partialorder %v1401_v44, %v219_v50  ;;  %651 = vmatpush1.bf16.msra.mxu0 %v1130_v48  ;;  %v1122_v50 = vcombine.low %v413_v43, %v417_v45  ;;  %v1116_v43 = vcombine.low %v410_v32, %v414_v33  ;;  %v1129_v45 = vcombine.high %v420_v40, %v424_v41  ;;  %v412_v48 = vld [vmem:[#allocation7 + $0x10] sm:$0xff]  ;;  %v1572_v32 = vld [vmem:[#allocation9] sm:$0xff] }
 0x1c1   :  { %v225_v51 = vsel %vm223_vm5, %v1405_v46, 16.0  ;;  %652 = vmatprep.subr.bf16.mxu0 %v1123_v49  ;;  %v416_v49 = vld [vmem:[#allocation7 + $0x30] sm:$0xff]  ;;  %v954_v33 = vsub.s32 3, %v1383_v7 }
 0x1c2   :  { %v227_v52 = vsel %vm189_vm3, %v225_v51, inf }
 0x1c3   :  { %228 = vmin.xlane.f32.xlu1 %v227_v52 }
 0x1c4   :  { %653 = vmatpush1.bf16.msra.mxu0 %v1122_v50  ;;  %v1128_v50 = vcombine.low %v420_v40, %v424_v41 }
 0x1c7   :  { %1135 = vmatmul.mubr.msk.bf16.vlgmr.msra.gmra.mxu0 %vm86_vm0, %v1448_v47 }
 0x1c8   :  { %792 = vmatprep.mubr.bf16.mxu0 %v1312_v36 }
 0x248   :  { %v232_v53 = vpop.xlane.xlu0 %231 }
 0x249   :  { %vm234_vm6 = vcmp.eq.f32.partialorder %v1405_v46, %v232_v53 }
 0x24a   :  { %v238_v54 = vsel %vm234_vm6, -1e+30, %v1397_v42  ;;  %v236_v4 = vsel %vm234_vm6, 1.0, %v1311_v10 }
 0x24b   :  { %v242_v55 = vsel %vm189_vm3, %v238_v54, -inf }
 0x24c   :  { %243 = vmax.xlane.f32.xlu0 %v242_v55  ;;  %v229_v56 = vpop.xlane.xlu1 %228  ;;  %v304_v55 = vsub.f32 1.0, %v1388_v11 }
 0x24d   :  { %vm233_vm7 = vcmp.eq.f32.partialorder %v1405_v46, %v229_v56 }
 0x24e   :  { %v237_v57 = vsel %vm233_vm7, -1e+30, %v1401_v44  ;;  %v235_v12 = vsel %vm233_vm7, 1.0, %v1311_v10 }
 0x24f   :  { %v239_v58 = vsel %vm189_vm3, %v237_v57, -inf }
 0x250   :  { %240 = vmax.xlane.f32.xlu1 %v239_v58 }
 0x2d5   :  { %v244_v59 = vpop.xlane.xlu0 %243 }
 0x2d6   :  { %vm246_vm8 = vcmp.eq.f32.partialorder %v238_v54, %v244_v59  ;;  %v303_v59 = vsub.f32 1.0, %v1391_v13 }
 0x2d7   :  { %v248_v60 = vsel %vm246_vm8, %v1405_v46, 16.0 }
 0x2d8   :  { %v252_v61 = vsel %vm189_vm3, %v248_v60, inf }
 0x2d9   :  { %253 = vmin.xlane.f32.xlu0 %v252_v61  ;;  %v241_v62 = vpop.xlane.xlu1 %240 }
 0x2da   :  { %vm245_vm9 = vcmp.eq.f32.partialorder %v237_v57, %v241_v62 }
 0x2db   :  { %v247_v63 = vsel %vm245_vm9, %v1405_v46, 16.0 }
 0x2dc   :  { %v249_v2 = vsel %vm189_vm3, %v247_v63, inf }
 0x2dd   :  { %250 = vmin.xlane.f32.xlu1 %v249_v2 }
 0x362   :  { %v254_v3 = vpop.xlane.xlu0 %253 }
 0x363   :  { %vm256_vm10 = vcmp.eq.f32.partialorder %v1405_v46, %v254_v3 }
 0x364   :  { %v258_v5 = vsel %vm256_vm10, 1.0, %v236_v4  ;;  %v260_v6 = vsel %vm256_vm10, -1e+30, %v238_v54 }
 0x365   :  { %v264_v8 = vsel %vm189_vm3, %v260_v6, -inf }
 0x366   :  { %265 = vmax.xlane.f32.xlu0 %v264_v8  ;;  %v251_v9 = vpop.xlane.xlu1 %250 }
 0x367   :  { %vm255_vm11 = vcmp.eq.f32.partialorder %v1405_v46, %v251_v9 }
 0x368   :  { %v257_v14 = vsel %vm255_vm11, 1.0, %v235_v12  ;;  %v259_v15 = vsel %vm255_vm11, -1e+30, %v237_v57 }
 0x369   :  { %v261_v16 = vsel %vm189_vm3, %v259_v15, -inf }
 0x36a   :  { %262 = vmax.xlane.f32.xlu1 %v261_v16 }
 0x3ef   :  { %v266_v17 = vpop.xlane.xlu0 %265 }
 0x3f0   :  { %vm268_vm12 = vcmp.eq.f32.partialorder %v260_v6, %v266_v17 }
 0x3f1   :  { %v270_v18 = vsel %vm268_vm12, %v1405_v46, 16.0 }
 0x3f2   :  { %v274_v19 = vsel %vm189_vm3, %v270_v18, inf }
 0x3f3   :  { %275 = vmin.xlane.f32.xlu0 %v274_v19  ;;  %v263_v20 = vpop.xlane.xlu1 %262 }
 0x3f4   :  { %vm267_vm13 = vcmp.eq.f32.partialorder %v259_v15, %v263_v20 }
 0x3f5   :  { %v269_v21 = vsel %vm267_vm13, %v1405_v46, 16.0 }
 0x3f6   :  { %v271_v10 = vsel %vm189_vm3, %v269_v21, inf }
 0x3f7   :  { %272 = vmin.xlane.f32.xlu1 %v271_v10 }
 0x47c   :  { %v276_v22 = vpop.xlane.xlu0 %275 }
 0x47d   :  { %vm278_vm14 = vcmp.eq.f32.partialorder %v1405_v46, %v276_v22 }
 0x47e   :  { %v280_v23 = vsel %vm278_vm14, 1.0, %v258_v5  ;;  %v282_v24 = vsel %vm278_vm14, -1e+30, %v260_v6 }
 0x47f   :  { %v286_v25 = vsel %vm189_vm3, %v282_v24, -inf }
 0x480   :  { %287 = vmax.xlane.f32.xlu0 %v286_v25  ;;  %v273_v26 = vpop.xlane.xlu1 %272 }
 0x481   :  { %vm277_vm15 = vcmp.eq.f32.partialorder %v1405_v46, %v273_v26  ;;  %v418_v26 = vld [vmem:[#allocation7 + $0x40] sm:$0xff] }
 0x482   :  { %v279_v27 = vsel %vm277_vm15, 1.0, %v257_v14  ;;  %v281_v28 = vsel %vm277_vm15, -1e+30, %v259_v15 }
 0x483   :  { %v283_v29 = vsel %vm189_vm3, %v281_v28, -inf }
 0x484   :  { %284 = vmax.xlane.f32.xlu1 %v283_v29 }
 0x509   :  { %v288_v0 = vpop.xlane.xlu0 %287 }
 0x50a   :  { %vm290_vm1 = vcmp.eq.f32.partialorder %v282_v24, %v288_v0  ;;  %v1121_v0 = vcombine.high %v412_v48, %v416_v49 }
 0x50b   :  { %v292_v1 = vsel %vm290_vm1, %v1405_v46, 16.0 }
 0x50c   :  { %v296_v51 = vsel %vm189_vm3, %v292_v1, inf  ;;  %v1120_v1 = vcombine.low %v412_v48, %v416_v49  ;;  %v955_v48 = vrot.slane %v1572_v32, %v954_v33 }
 0x50d   :  { %297 = vmin.xlane.f32.xlu0 %v296_v51  ;;  %v285_v52 = vpop.xlane.xlu1 %284  ;;  %v684_v51 = vstv %s1115_s3 }
 0x50e   :  { %vm289_vm2 = vcmp.eq.f32.partialorder %v281_v28, %v285_v52 }
 0x50f   :  { %v291_v53 = vsel %vm289_vm2, %v1405_v46, 16.0 }
 0x510   :  { %v293_v54 = vsel %vm189_vm3, %v291_v53, inf  ;;  %v681_v53 = vstv %s1114_s4 }
 0x511   :  { %294 = vmin.xlane.f32.xlu1 %v293_v54 }
 0x596   :  { %v298_v56 = vpop.xlane.xlu0 %297 }
 0x597   :  { %vm300_vm4 = vcmp.eq.f32.partialorder %v1405_v46, %v298_v56 }
 0x598   :  { %v302_v57 = vsel %vm300_vm4, 1.0, %v280_v23 }
 0x599   :  { %v306_v58 = vmul.f32 %v304_v55, %v302_v57 }
 0x59a   :  { %v295_v60 = vpop.xlane.xlu1 %294 }
 0x59b   :  { %v308_v61 = vmul.f32 %v1397_v42, %v306_v58  ;;  %vm299_vm5 = vcmp.eq.f32.partialorder %v1405_v46, %v295_v60  ;;  %v1478_v46 = vpop.f32.mrf.mxu0 }
 0x59c   :  { %v301_v62 = vsel %vm299_vm5, 1.0, %v279_v27  ;;  %v422_v27 = vld [vmem:[#allocation7 + $0x60] sm:$0xff] }
 0x59d   :  { %v1466_v63 = vadd.f32 %v1388_v11, %v308_v61  ;;  %v305_v2 = vmul.f32 %v303_v59, %v301_v62  ;;  %v1480_v11 = vpop.f32.mrf.mxu0  ;;  %v1125_v35 = vcombine.high %v418_v26, %v422_v27  ;;  %v1124_v38 = vcombine.low %v418_v26, %v422_v27 }
 0x59f   :  { %v307_v3 = vmul.f32 %v1401_v44, %v305_v2  ;;  %v314_v4 = vsel %vm189_vm3, %v1466_v63, 0.0  ;;  %v1482_v44 = vpop.f32.mrf.mxu0  ;;  %v683_v56 = vmul.f32 %v681_v53, %v1466_v63 }
 0x5a0   :  { %315 = vadd.xlane.f32.xlu0 %v314_v4 }
 0x5a1   :  { %v1472_v5 = vadd.f32 %v1391_v13, %v307_v3  ;;  %v1484_v12 = vpop.f32.mrf.mxu0 }
 0x5a3   :  { %1159 = vmatprep.mubr.msk.f32.mxu1 %vm189_vm3, %v1472_v5  ;;  %v311_v42 = vsel %vm189_vm3, %v1472_v5, 0.0  ;;  %v1486_v14 = vpop.f32.mrf.mxu0  ;;  %v682_v57 = vmul.f32 %v681_v53, %v1472_v5 }
 0x5a4   :  { %312 = vadd.xlane.f32.xlu1 %v311_v42 }
 0x5a5   :  { %v1488_v15 = vpop.f32.mrf.mxu0 }
 0x5a7   :  { %v1492_v17 = vpop.f32.mrf.mxu0 }
 0x5a9   :  { %v1500_v21 = vpop.f32.mrf.mxu0 }
 0x629   :  { %v316_v6 = vpop.xlane.xlu0 %315 }
 0x62a   :  { %v318_v8 = vadd.f32 1.0, %v316_v6 }
 0x62c   :  { %1180 = vrsqrt.f32 %v318_v8 }
 0x62d   :  { %v313_v9 = vpop.xlane.xlu1 %312 }
 0x62e   :  { %v317_v13 = vadd.f32 1.0, %v313_v9 }
 0x630   :  { %1182 = vrsqrt.f32 %v317_v13 }
 0x639   :  { %v1490_v16 = vpop.eup %1180 }
 0x63a   :  { %v322_v18 = vmul.f32 %v1490_v16, %v1490_v16  ;;  %v700_v20 = vmul.f32 %v1490_v16, %v1482_v44  ;;  %v701_v24 = vmul.f32 %v1490_v16, %v1484_v12  ;;  %v705_v31 = vmul.f32 %v1490_v16, %v1500_v21 }
 0x63c   :  { %v324_v10 = vmul.f32 %v322_v18, %v1466_v63 }
 0x63d   :  { %v1496_v19 = vpop.eup %1182 }
 0x63e   :  { %v692_v22 = vmul.f32 %v1496_v19, %v1478_v46  ;;  %v693_v23 = vmul.f32 %v1496_v19, %v1480_v11  ;;  %v697_v25 = vmul.f32 %v1496_v19, %v1488_v15  ;;  %1155 = vmatprep.subr.mxu1 %v324_v10  ;;  %v321_v28 = vmul.f32 %v1496_v19, %v1496_v19 }
 0x63f   :  { %1156 = vmatpush3.msra.mxu1 %v324_v10  ;;  %v696_v59 = vmul.f32 %v1496_v19, %v1486_v14 }
 0x640   :  { %v708_v29 = vpack.c.bf16 %v700_v20, %v692_v22  ;;  %v709_v30 = vpack.c.bf16 %v701_v24, %v693_v23  ;;  %v323_v34 = vmul.f32 %v321_v28, %v1472_v5  ;;  %v713_v37 = vpack.c.bf16 %v705_v31, %v697_v25 }
 0x641   :  { %v1570_v31 = vstv %s406_s17 }
 0x642   :  { %774 = vmatprep.subr.bf16.mxu0 %v709_v30  ;;  %1157 = vmatprep.subr.mxu1 %v323_v34  ;;  %v950_v30 = vsub.s32 2, %v1383_v7  ;;  %v900_v49 = vmul.f32 %v1570_v31, %v1482_v44  ;;  %v897_v53 = vmul.f32 %v1570_v31, %v1488_v15  ;;  %v970_v44 = vsub.s32 7, %v1383_v7 }
 0x643   :  { %775 = vmatpush1.bf16.msra.mxu0 %v708_v29  ;;  %1158 = vmatpush3.msra.mxu1 %v323_v34 }
 0x644   :  { %860 = vmatprep.subr.bf16.mxu0 %v713_v37  ;;  %1160 = vmatmul.mubr.msk.f32.vlgmr.msra.gmra.mxu1 %vm189_vm3, %v1466_v63 }
 0x645   :  { %521 = vmatprep.subr.bf16.mxu1 %v1125_v35  ;;  %541 = vmatprep.mubr.bf16.mxu1 %v1312_v36  ;;  %v1575_v35 = vld [vmem:[#allocation10] sm:$0xff] }
 0x646   :  { %522 = vmatpush1.bf16.msra.mxu1 %v1124_v38  ;;  %v951_v38 = vrot.slane %v1572_v32, %v950_v30 }
 0x647   :  { %523 = vmatprep.subr.bf16.mxu1 %v1117_v39  ;;  %v893_v39 = vmul.f32 %v1570_v31, %v1480_v11 }
 0x64a   :  { %524 = vmatpush1.bf16.msra.mxu1 %v1116_v43  ;;  %v1009_v43 = vrot.slane %v1575_v35, %v950_v30 }
 0x64b   :  { %607 = vmatprep.subr.bf16.mxu1 %v1129_v45 }
 0x64d   :  { %1132 = vmatmul.mubr.msk.bf16.vlgmr.msra.gmra.mxu1 %vm86_vm0, %v1448_v47 }
 0x64e   :  { %608 = vmatpush1.bf16.msra.mxu1 %v1128_v50  ;;  %627 = vmatprep.mubr.bf16.mxu1 %v1312_v36 }
 0x64f   :  { %609 = vmatprep.subr.bf16.mxu1 %v1121_v0 }
 0x652   :  { %610 = vmatpush1.bf16.msra.mxu1 %v1120_v1 }
 0x655   :  { %1134 = vmatmul.mubr.msk.bf16.vlgmr.msra.gmra.mxu1 %vm86_vm0, %v1448_v47  ;;  %v704_v47 = vmul.f32 %v1490_v16, %v1492_v17 }
 0x656   :  { %749 = vmatprep.mubr.bf16.mxu1 %v1312_v36 }
 0x657   :  { %v712_v2 = vpack.c.bf16 %v704_v47, %v696_v59  ;;  %v904_v59 = vmul.f32 %v1570_v31, %v1492_v17  ;;  %v971_v17 = vrot.slane %v1572_v32, %v970_v44 }
 0x704   :  { %v1161_v52 = vpop.f32.mrf.mxu1 }
 0x705   :  { %v686_v54 = vmul.f32 %v1161_v52, %v684_v51  ;;  %v896_v52 = vmul.f32 %v1570_v31, %v1486_v14 }
 0x706   :  { %v397_v55 = vpop.f32.mrf.mxu1 }
 0x707   :  { %v685_v58 = vmul.f32 %v684_v51, %v397_v55  ;;  %v688_v60 = vadd.f32 %v686_v54, %v683_v56  ;;  %v1013_v51 = vrot.slane %v1575_v35, %v954_v33  ;;  %v966_v55 = vsub.s32 6, %v1383_v7 }
 0x709   :  { %v687_v61 = vadd.f32 %v685_v58, %v682_v57 }
 0x70b   :  { %v689_v62 = vpack.c.bf16 %v688_v60, %v687_v61  ;;  %v905_v60 = vmul.f32 %v1570_v31, %v1500_v21  ;;  %v942_v21 = vsub.s32 0, %v1383_v7 }
 0x70d   :  { %v1531_v3 = vpop.f32.mrf.mxu1  ;;  %1137 = vmatmul.mubr.msk.bf16.vlgmr.msra.gmra.mxu0 %vm189_vm3, %v689_v62 }
 0x70e   :  { %861 = vmatpush1.bf16.msra.mxu0 %v712_v2  ;;  %878 = vmatprep.mubr.bf16.mxu0 %v1312_v36  ;;  %v690_v9 = vmul.f32 %v1496_v19, %v1531_v3  ;;  %v890_v14 = vmul.f32 %v1570_v31, %v1531_v3 }
 0x70f   :  { %v1534_v4 = vpop.f32.mrf.mxu1 }
 0x710   :  { %v691_v6 = vmul.f32 %v1496_v19, %v1534_v4  ;;  %v891_v15 = vmul.f32 %v1570_v31, %v1534_v4 }
 0x711   :  { %v1537_v63 = vpop.f32.mrf.mxu1 }
 0x712   :  { %v698_v5 = vmul.f32 %v1490_v16, %v1537_v63 }
 0x713   :  { %v1541_v42 = vpop.f32.mrf.mxu1 }
 0x714   :  { %v699_v8 = vmul.f32 %v1490_v16, %v1541_v42  ;;  %v706_v20 = vpack.c.bf16 %v698_v5, %v690_v9 }
 0x715   :  { %v1549_v13 = vpop.f32.mrf.mxu1  ;;  %1139 = vmatmul.mubr.msk.bf16.vlgmr.msra.gmra.mxu0 %vm189_vm3, %v689_v62 }
 0x716   :  { %v707_v18 = vpack.c.bf16 %v699_v8, %v691_v6  ;;  %v694_v27 = vmul.f32 %v1496_v19, %v1549_v13  ;;  %v967_v8 = vrot.slane %v1572_v32, %v966_v55 }
 0x717   :  { %v1552_v10 = vpop.f32.mrf.mxu1 }
 0x718   :  { %731 = vmatprep.subr.bf16.mxu1 %v707_v18  ;;  %v695_v25 = vmul.f32 %v1496_v19, %v1552_v10 }
 0x719   :  { %v1554_v22 = vpop.f32.mrf.mxu1  ;;  %732 = vmatpush1.bf16.msra.mxu1 %v706_v20 }
 0x71a   :  { %v702_v23 = vmul.f32 %v1490_v16, %v1554_v22 }
 0x71b   :  { %v1558_v24 = vpop.f32.mrf.mxu1 }
 0x71c   :  { %v703_v26 = vmul.f32 %v1490_v16, %v1558_v24  ;;  %1136 = vmatmul.mubr.msk.bf16.vlgmr.msra.gmra.mxu1 %vm189_vm3, %v689_v62  ;;  %v710_v29 = vpack.c.bf16 %v702_v23, %v694_v27 }
 0x71d   :  { %835 = vmatprep.mubr.bf16.mxu1 %v1312_v36  ;;  %v892_v36 = vmul.f32 %v1570_v31, %v1478_v46  ;;  %v901_v46 = vmul.f32 %v1570_v31, %v1484_v12 }
 0x71e   :  { %v711_v28 = vpack.c.bf16 %v703_v26, %v695_v25  ;;  %v1025_v25 = vrot.slane %v1575_v35, %v966_v55  ;;  %v1029_v26 = vrot.slane %v1575_v35, %v970_v44 }
 0x720   :  { %817 = vmatprep.subr.bf16.mxu1 %v711_v28  ;;  %v946_v28 = vsub.s32 1, %v1383_v7 }
 0x721   :  { %818 = vmatpush1.bf16.msra.mxu1 %v710_v29 }
 0x722   :  { %v1005_v55 = vrot.slane %v1575_v35, %v946_v28 }
 0x724   :  { %1138 = vmatmul.mubr.msk.bf16.vlgmr.msra.gmra.mxu1 %vm189_vm3, %v689_v62 }
 0x7cd   :  { %v794_v34 = vpop.f32.mrf.mxu0 }
 0x7ce   :  { %v908_v37 = vmul.f32 %v1496_v19, %v794_v34 }
 0x7cf   :  { %v796_v40 = vpop.f32.mrf.mxu0 }
 0x7d0   :  { %v924_v41 = vadd.f32 %v908_v37, %v892_v36  ;;  %v909_v45 = vmul.f32 %v1496_v19, %v796_v40  ;;  %v898_v36 = vmul.f32 %v1570_v31, %v1537_v63  ;;  %v899_v37 = vmul.f32 %v1570_v31, %v1541_v42 }
 0x7d1   :  { %v798_v50 = vpop.f32.mrf.mxu0  ;;  %v943_v40 = vrot.slane %v1572_v32, %v942_v21 }
 0x7d2   :  { %v982_v0 = vmul.f32 %v951_v38, %v924_v41  ;;  %v925_v1 = vadd.f32 %v909_v45, %v893_v39  ;;  %v916_v11 = vmul.f32 %v1490_v16, %v798_v50  ;;  %v1001_v50 = vrot.slane %v1575_v35, %v942_v21 }
 0x7d3   :  { %v800_v54 = vpop.f32.mrf.mxu0 }
 0x7d4   :  { %v1040_v56 = vadd.f32 %v1009_v43, %v982_v0  ;;  %v983_v12 = vmul.f32 %v955_v48, %v925_v1  ;;  %v932_v57 = vadd.f32 %v916_v11, %v900_v49  ;;  %v917_v58 = vmul.f32 %v1490_v16, %v800_v54 }
 0x7d5   :  { %v880_v61 = vpop.f32.mrf.mxu0  ;;  %v947_v1 = vrot.slane %v1572_v32, %v946_v28 }
 0x7d6   :  { %v1056_v47 = vmax.f32 %v1040_v56, 0.0  ;;  %v1041_v62 = vadd.f32 %v1013_v51, %v983_v12  ;;  %v990_v2 = vmul.f32 %v951_v38, %v932_v57  ;;  %v933_v5 = vadd.f32 %v917_v58, %v901_v46 }
 0x7d7   :  { %v912_v6 = vmul.f32 %v1496_v19, %v880_v61  ;;  %v882_v9 = vpop.f32.mrf.mxu0  ;;  %v958_v56 = vsub.s32 4, %v1383_v7  ;;  %v894_v61 = vmul.f32 %v1570_v31, %v1549_v13 }
 0x7d8   :  { %1072 = vst [vmem:[#allocation12 + $0x10] sm:$0xff] %v1056_v47  ;;  %v1057_v18 = vmax.f32 %v1041_v62, 0.0  ;;  %v1048_v3 = vadd.f32 %v1009_v43, %v990_v2  ;;  %v991_v20 = vmul.f32 %v955_v48, %v933_v5  ;;  %v913_v4 = vmul.f32 %v1496_v19, %v882_v9 }
 0x7d9   :  { %v928_v23 = vadd.f32 %v912_v6, %v896_v52  ;;  %v884_v27 = vpop.f32.mrf.mxu0  ;;  %v962_v2 = vsub.s32 5, %v1383_v7  ;;  %v895_v9 = vmul.f32 %v1570_v31, %v1552_v10  ;;  %v959_v13 = vrot.slane %v1572_v32, %v958_v56 }
 0x7da   :  { %1073 = vst [vmem:[#allocation12 + $0x18] sm:$0xff] %v1057_v18  ;;  %v1064_v29 = vmax.f32 %v1048_v3, 0.0  ;;  %v1049_v30 = vadd.f32 %v1013_v51, %v991_v20  ;;  %v929_v33 = vadd.f32 %v913_v4, %v897_v53  ;;  %v920_v34 = vmul.f32 %v1490_v16, %v884_v27 }
 0x7db   :  { %v986_v38 = vmul.f32 %v967_v8, %v928_v23  ;;  %v886_v41 = vpop.f32.mrf.mxu0  ;;  %v963_v28 = vrot.slane %v1572_v32, %v962_v2 }
 0x7dc   :  { %v751_v39 = vpop.f32.mrf.mxu1  ;;  %1080 = vst [vmem:[#allocation12 + $0x50] sm:$0xff] %v1064_v29  ;;  %v1065_v43 = vmax.f32 %v1049_v30, 0.0  ;;  %v987_v45 = vmul.f32 %v971_v17, %v929_v33  ;;  %v936_v48 = vadd.f32 %v920_v34, %v904_v59  ;;  %v921_v0 = vmul.f32 %v1490_v16, %v886_v41 }
 0x7dd   :  { %v906_v49 = vmul.f32 %v1496_v19, %v751_v39  ;;  %v1044_v46 = vadd.f32 %v1025_v25, %v986_v38  ;;  %v902_v33 = vmul.f32 %v1570_v31, %v1554_v22  ;;  %v903_v22 = vmul.f32 %v1570_v31, %v1558_v24 }
 0x7de   :  { %v753_v63 = vpop.f32.mrf.mxu1  ;;  %1081 = vst [vmem:[#allocation12 + $0x58] sm:$0xff] %v1065_v43  ;;  %v1045_v42 = vadd.f32 %v1029_v26, %v987_v45  ;;  %v994_v51 = vmul.f32 %v967_v8, %v936_v48  ;;  %v937_v54 = vadd.f32 %v921_v0, %v905_v60 }
 0x7df   :  { %v922_v11 = vadd.f32 %v906_v49, %v890_v14  ;;  %v907_v52 = vmul.f32 %v1496_v19, %v753_v63  ;;  %v1060_v53 = vmax.f32 %v1044_v46, 0.0 }
 0x7e0   :  { %v755_v44 = vpop.f32.mrf.mxu1  ;;  %v1061_v12 = vmax.f32 %v1045_v42, 0.0  ;;  %v1052_v57 = vadd.f32 %v1025_v25, %v994_v51  ;;  %v995_v47 = vmul.f32 %v971_v17, %v937_v54  ;;  %v1017_v25 = vrot.slane %v1575_v35, %v958_v56 }
 0x7e1   :  { %v980_v58 = vmul.f32 %v943_v40, %v922_v11  ;;  %v923_v59 = vadd.f32 %v907_v52, %v891_v15  ;;  %1076 = vst [vmem:[#allocation12 + $0x30] sm:$0xff] %v1060_v53  ;;  %v914_v14 = vmul.f32 %v1490_v16, %v755_v44 }
 0x7e2   :  { %v757_v62 = vpop.f32.mrf.mxu1  ;;  %1077 = vst [vmem:[#allocation12 + $0x38] sm:$0xff] %v1061_v12  ;;  %v1068_v60 = vmax.f32 %v1052_v57, 0.0  ;;  %v1053_v15 = vadd.f32 %v1029_v26, %v995_v47 }
 0x7e3   :  { %v1038_v5 = vadd.f32 %v1001_v50, %v980_v58  ;;  %v981_v6 = vmul.f32 %v947_v1, %v923_v59  ;;  %v915_v8 = vmul.f32 %v1490_v16, %v757_v62  ;;  %v930_v21 = vadd.f32 %v914_v14, %v898_v36 }
 0x7e4   :  { %v837_v18 = vpop.f32.mrf.mxu1  ;;  %1084 = vst [vmem:[#allocation12 + $0x70] sm:$0xff] %v1068_v60  ;;  %v1069_v4 = vmax.f32 %v1053_v15, 0.0  ;;  %v1021_v36 = vrot.slane %v1575_v35, %v962_v2 }
 0x7e5   :  { %v1054_v17 = vmax.f32 %v1038_v5, 0.0  ;;  %v1039_v3 = vadd.f32 %v1005_v55, %v981_v6  ;;  %v931_v20 = vadd.f32 %v915_v8, %v899_v37  ;;  %v910_v7 = vmul.f32 %v1496_v19, %v837_v18 }
 0x7e6   :  { %v988_v23 = vmul.f32 %v943_v40, %v930_v21  ;;  %v839_v27 = vpop.f32.mrf.mxu1  ;;  %1085 = vst [vmem:[#allocation12 + $0x78] sm:$0xff] %v1069_v4 }
 0x7e7   :  { %1070 = vst [vmem:[#allocation12] sm:$0xff] %v1054_v17  ;;  %v1055_v10 = vmax.f32 %v1039_v3, 0.0  ;;  %v989_v26 = vmul.f32 %v947_v1, %v931_v20  ;;  %v926_v29 = vadd.f32 %v910_v7, %v894_v61  ;;  %v911_v30 = vmul.f32 %v1496_v19, %v839_v27 }
 0x7e8   :  { %v1046_v34 = vadd.f32 %v1001_v50, %v988_v23  ;;  %v841_v37 = vpop.f32.mrf.mxu1 }
 0x7e9   :  { %1071 = vst [vmem:[#allocation12 + $0x8] sm:$0xff] %v1055_v10  ;;  %v1047_v38 = vadd.f32 %v1005_v55, %v989_v26  ;;  %v984_v39 = vmul.f32 %v959_v13, %v926_v29  ;;  %v927_v40 = vadd.f32 %v911_v30, %v895_v9  ;;  %v918_v32 = vmul.f32 %v1490_v16, %v841_v37 }
 0x7ea   :  { %v1062_v41 = vmax.f32 %v1046_v34, 0.0  ;;  %v843_v43 = vpop.f32.mrf.mxu1 }
 0x7eb   :  { %v1063_v45 = vmax.f32 %v1047_v38, 0.0  ;;  %v1042_v48 = vadd.f32 %v1017_v25, %v984_v39  ;;  %v985_v49 = vmul.f32 %v963_v28, %v927_v40  ;;  %v934_v19 = vadd.f32 %v918_v32, %v902_v33 }
 0x7ec   :  { %1078 = vst [vmem:[#allocation12 + $0x40] sm:$0xff] %v1062_v41  ;;  %v919_v46 = vmul.f32 %v1490_v16, %v843_v43 }
 0x7ed   :  { %1079 = vst [vmem:[#allocation12 + $0x48] sm:$0xff] %v1063_v45  ;;  %v1058_v35 = vmax.f32 %v1042_v48, 0.0  ;;  %v1043_v50 = vadd.f32 %v1021_v36, %v985_v49  ;;  %v992_v0 = vmul.f32 %v959_v13, %v934_v19 }
 0x7ee   :  { %v935_v63 = vadd.f32 %v919_v46, %v903_v22 }
 0x7ef   :  { %1074 = vst [vmem:[#allocation12 + $0x20] sm:$0xff] %v1058_v35  ;;  %v1059_v1 = vmax.f32 %v1043_v50, 0.0  ;;  %v1050_v42 = vadd.f32 %v1017_v25, %v992_v0 }
 0x7f0   :  { %v993_v51 = vmul.f32 %v963_v28, %v935_v63 }
 0x7f1   :  { %1075 = vst [vmem:[#allocation12 + $0x28] sm:$0xff] %v1059_v1  ;;  %v1066_v11 = vmax.f32 %v1050_v42, 0.0 }
 0x7f2   :  { %v1051_v52 = vadd.f32 %v1021_v36, %v993_v51 }
 0x7f3   :  { %1082 = vst [vmem:[#allocation12 + $0x60] sm:$0xff] %v1066_v11 }
 0x7f4   :  { %v1067_v24 = vmax.f32 %v1051_v52, 0.0 }
 0x7f6   :  { %1083 = vst [vmem:[#allocation12 + $0x68] sm:$0xff] %v1067_v24 }
 0x7f7   :  { %1283 = shalt.err (!%p1280_p10)
}
 0x7f8   :  { %s1314_s21 = smov 1024   ;;  %s1315_s22 = smov 64  }
 0x7f9   :  { %1097 = dma.vmem_to_hbm [thread:$0]  %s1092_s19, 2048, %s1655_s5, [#allocation4], %s1314_s21, %s1314_s21, %s1315_s22  }
 0x7fa   :  { %1300 = dma.done.wait [#allocation4], 2048  }
 0x7fb   :  { %1301 = vsyncadd [#allocation4], 4294965248 }
 0x7fc   :  { %1101 = vsyncpa [#allocation3], 1 }
 0x7fd   :  { %1102 = vsyncpa [#allocation8], 1 }
 0x7fe   :  { %1103 = vsyncpa [#allocation11], 1 }
 0x7ff   :  { %1104 = vsyncpa [#allocation4], 1 }
 0x800   :  { %1105 = vsyncpa [#allocation5], 1 }

</bundles_post_ra>
